<compile_context>
chip_gen: v5e
topology: v5e:2x2
jax: 0.10.0
libtpu: 0.0.40
codegen_flags: <defaults>
</compile_context>

<pallas_src>
import jax
import jax.numpy as jnp
from jax.experimental import pallas as pl
from jax.experimental.pallas import tpu as pltpu

_MIB = 1024 * 1024


def _gelu_tanh(x):
    # Matches torch.nn.GELU(approximate='tanh')
    c = 0.7978845608028654  # sqrt(2/pi)
    return 0.5 * x * (1.0 + jnp.tanh(c * (x + 0.044715 * x * x * x)))


# --------------------------------------------------------------------------
# Kernels
# --------------------------------------------------------------------------

def _mlp_kernel_resident(x_ref, wfc_ref, bfc_ref, wpj_ref, bpj_ref, o_ref):
    # Full weights live in VMEM (constant block index); 1-D grid over row tiles.
    # x_ref: (tm, C)  wfc_ref: (C, F)  bfc_ref: (1, F)
    # wpj_ref: (F, C) bpj_ref: (1, C)  o_ref: (tm, C)
    h = jnp.dot(x_ref[...], wfc_ref[...], preferred_element_type=jnp.float32)
    h = _gelu_tanh(h + bfc_ref[...].astype(jnp.float32))
    # Cast the hidden activation to the weight dtype (e.g. bf16) so the MXU
    # runs at its native rate; keep the f32 accumulation.
    acc = jnp.dot(h.astype(wpj_ref.dtype), wpj_ref[...],
                  preferred_element_type=jnp.float32)
    o_ref[...] = (acc + bpj_ref[...].astype(jnp.float32)).astype(o_ref.dtype)


def _mlp_kernel_streamed(x_ref, wfc_ref, bfc_ref, wpj_ref, bpj_ref, o_ref,
                         acc_ref):
    # Hidden dim F tiled as the last ("arbitrary") grid axis; GELU recomputed
    # per F-block; second matmul accumulates into a resident f32 scratch.
    f = pl.program_id(1)

    @pl.when(f == 0)
    def _():
        acc_ref[...] = jnp.zeros_like(acc_ref)

    h = jnp.dot(x_ref[...], wfc_ref[...], preferred_element_type=jnp.float32)
    h = _gelu_tanh(h + bfc_ref[...].astype(jnp.float32))
    acc_ref[...] += jnp.dot(h.astype(wpj_ref.dtype), wpj_ref[...],
                            preferred_element_type=jnp.float32)

    @pl.when(f == pl.num_programs(1) - 1)
    def _():
        o_ref[...] = (acc_ref[...]
                      + bpj_ref[...].astype(jnp.float32)).astype(o_ref.dtype)


# --------------------------------------------------------------------------
# Configuration helpers
# --------------------------------------------------------------------------

def _tpu_vmem_bytes():
    try:
        info = pltpu.get_tpu_info()
        vmem = int(getattr(info, "vmem_capacity_bytes", 0) or 0)
        if vmem > 0:
            return vmem
    except Exception:
        pass
    return 128 * _MIB  # v5e / v6e default


def _sublane_multiple(dtype):
    # Packed-sublane multiple for dense (unmasked) vld/vst on the row tiles.
    return {4: 8, 2: 16, 1: 32}.get(jnp.dtype(dtype).itemsize, 8)


def _pick_row_tile(M, target, sub_mult):
    """Pick tm <= min(target, M). Prefer aligned exact divisors of M (no pad)."""
    cap = min(target, M)
    if cap >= sub_mult:
        cap_al = (cap // sub_mult) * sub_mult
        for t in range(cap_al, sub_mult - 1, -sub_mult):
            if M % t == 0:
                return t, False
    # No aligned divisor found.  A single full-extent block is always legal.
    if M <= max(target, sub_mult):
        return M, False
    # Rare: ragged large M -> pad (extra rows are finite junk and dropped).
    t = max(sub_mult, (cap // sub_mult) * sub_mult)
    return t, True


def _vmem_needed(tm, tf, C, F, isz_x, isz_w, isz_o, resident):
    """Conservative per-step VMEM estimate (assumes double-buffered blocks)."""
    need = 2 * tm * C * isz_x                 # x tile
    need += 2 * tm * C * isz_o                # out tile
    need += 2 * (C * tf + tf * C) * isz_w     # weight blocks
    need += 2 * (tf + C) * isz_w              # bias blocks
    if not resident:
        need += tm * C * 4                    # f32 accumulator scratch
    need += int(2.5 * tm * tf * 4)            # hidden activation + GELU temps
    return need


# --------------------------------------------------------------------------
# Wrapper
# --------------------------------------------------------------------------

def mlp_forward(x, w_fc, b_fc, w_proj, b_proj, *, tm=None, tf=None,
                operand_dtype=None):
    """x: (B, T, C). w_fc: (C, F), b_fc: (F,), w_proj: (F, C), b_proj: (C,).

    operand_dtype: optional cast for x / weights at the boundary (e.g.
    jnp.bfloat16 on v5e).  Accumulation stays f32 inside the kernel; the
    output keeps x's original dtype.
    """
    B, T, C = x.shape
    Cw, F = w_fc.shape
    assert Cw == C and w_proj.shape == (F, C)
    assert b_fc.shape == (F,) and b_proj.shape == (C,)
    out_dtype = x.dtype

    if operand_dtype is not None:
        x = x.astype(operand_dtype)
        w_fc = w_fc.astype(operand_dtype)
        w_proj = w_proj.astype(operand_dtype)

    M = B * T
    isz_x = jnp.dtype(x.dtype).itemsize
    isz_w = jnp.dtype(w_fc.dtype).itemsize
    isz_o = jnp.dtype(out_dtype).itemsize
    sub_mult = _sublane_multiple(x.dtype)

    # ---- per-generation VMEM budget ----
    vmem_phys = _tpu_vmem_bytes()
    is_v7x = vmem_phys <= 64 * _MIB                  # 64 MiB VMEM, 2 TensorCores
    vmem_limit = min(int(vmem_phys * 0.75), 100 * _MIB)
    budget = int(vmem_limit * 0.85)

    def _f_tile_candidates():
        # Divisors of F that are multiples of 128 (256-multiples included),
        # descending.  Never returns a non-divisor / oversized fallback.
        cands = [d for d in range(F, 127, -1) if F % d == 0 and d % 128 == 0]
        return cands or [F]

    tm_cands = [1024, 768, 512, 384, 256, 128, 64, 32, 16, 8]
    if tm is not None:
        tm_cands = [int(tm)]

    resident = None
    tm_target = None
    tf_sel = None

    if tf is not None and int(tf) < F:
        # User forced the streamed (F-tiled) path.
        resident = False
        fc = [d for d in _f_tile_candidates() if d <= int(tf)]
        tf_sel = fc[0] if fc else _f_tile_candidates()[-1]
        for t in tm_cands:
            if _vmem_needed(t, tf_sel, C, F, isz_x, isz_w, isz_o, False) <= budget:
                tm_target = t
                break
        if tm_target is None:
            tm_target = tm_cands[-1]
    else:
        # Prefer full-weights-resident (tf == F): weights DMA'd once, no acc.
        for t in tm_cands:
            if _vmem_needed(t, F, C, F, isz_x, isz_w, isz_o, True) <= budget:
                resident, tm_target, tf_sel = True, t, F
                break
        if resident is None:
            # Stream the hidden dim: prefer big row tiles, then big F tiles.
            resident = False
            for t in tm_cands:
                for fcand in _f_tile_candidates():
                    if _vmem_needed(t, fcand, C, F, isz_x, isz_w, isz_o,
                                    False) <= budget:
                        tm_target, tf_sel = t, fcand
                        break
                if tm_target is not None:
                    break
            if tm_target is None:
                tm_target, tf_sel = tm_cands[-1], _f_tile_candidates()[-1]

    # v7x only (2 TensorCores): make sure there are >= 2 row tiles so both
    # cores get work.  On single-core v5e/v6e this would just double weight
    # re-streaming / step overhead, so it is gated off there.
    if is_v7x and tm_target >= M and M >= 2 * sub_mult:
        tm_target = max(sub_mult, ((M // 2) // sub_mult) * sub_mult)

    tm_sel, need_pad = _pick_row_tile(M, tm_target, sub_mult)
    M_pad = pl.cdiv(M, tm_sel) * tm_sel if need_pad else M

    x2 = x.reshape(M, C)
    if M_pad != M:
        # Rare fallback (no aligned divisor of M); padded rows are dropped.
        x2 = jnp.pad(x2, ((0, M_pad - M), (0, 0)))
    b_fc2 = b_fc.reshape(1, F)
    b_proj2 = b_proj.reshape(1, C)

    m_tiles = M_pad // tm_sel
    weight_bytes = (C * F + F * C + F + C) * isz_w

    if resident:
        grid = (m_tiles,)
        in_specs = [
            pl.BlockSpec((tm_sel, C), lambda i: (i, 0)),   # x rows
            pl.BlockSpec((C, F), lambda i: (0, 0)),        # c_fc weight (resident)
            pl.BlockSpec((1, F), lambda i: (0, 0)),        # c_fc bias
            pl.BlockSpec((F, C), lambda i: (0, 0)),        # c_proj weight (resident)
            pl.BlockSpec((1, C), lambda i: (0, 0)),        # c_proj bias
        ]
        out_specs = pl.BlockSpec((tm_sel, C), lambda i: (i, 0))
        scratch_shapes = []
        kernel = _mlp_kernel_resident
        dim_sem = ("parallel",)
        bytes_accessed = M_pad * C * (isz_x + isz_o) + weight_bytes
    else:
        f_tiles = F // tf_sel
        grid = (m_tiles, f_tiles)
        in_specs = [
            pl.BlockSpec((tm_sel, C), lambda i, f: (i, 0)),
            pl.BlockSpec((C, tf_sel), lambda i, f: (0, f)),
            pl.BlockSpec((1, tf_sel), lambda i, f: (0, f)),
            pl.BlockSpec((tf_sel, C), lambda i, f: (f, 0)),
            pl.BlockSpec((1, C), lambda i, f: (0, 0)),
        ]
        out_specs = pl.BlockSpec((tm_sel, C), lambda i, f: (i, 0))
        scratch_shapes = [pltpu.VMEM((tm_sel, C), jnp.float32)]
        kernel = _mlp_kernel_streamed
        dim_sem = ("parallel", "arbitrary")
        # Weights are re-streamed once per row tile when F is tiled.
        bytes_accessed = M_pad * C * (isz_x + isz_o) + m_tiles * weight_bytes

    cost = pl.CostEstimate(
        flops=4 * M_pad * C * F,
        transcendentals=M_pad * F,
        bytes_accessed=int(bytes_accessed),
    )

    out = pl.pallas_call(
        kernel,
        out_shape=jax.ShapeDtypeStruct((M_pad, C), out_dtype),
        grid_spec=pltpu.PrefetchScalarGridSpec(
            num_scalar_prefetch=0,
            grid=grid,
            in_specs=in_specs,
            out_specs=out_specs,
            scratch_shapes=scratch_shapes,
        ),
        compiler_params=pltpu.CompilerParams(
            dimension_semantics=dim_sem,
            vmem_limit_bytes=vmem_limit,
        ),
        cost_estimate=cost,
    )(x2, w_fc, b_fc2, w_proj, b_proj2)

    if M_pad != M:
        out = out[:M]
    return out.reshape(B, T, C)


def reference_mlp(x, w_fc, b_fc, w_proj, b_proj):
    h = jnp.dot(x, w_fc) + b_fc
    h = _gelu_tanh(h)
    return jnp.dot(h, w_proj) + b_proj


if __name__ == "__main__":
    # Small config consistent with GPT2Config: feedforward_dim = 4 * n_embd
    B, T, n_embd = 2, 8, 64
    ff = 4 * n_embd  # 256

    key = jax.random.PRNGKey(0)
    kx, k1, k2, k3, k4 = jax.random.split(key, 5)

    x = jax.random.normal(kx, (B, T, n_embd), dtype=jnp.float32)
    # nn.Linear(n_embd, ff).weight is (ff, n_embd); we pass it transposed (n_embd, ff)
    w_fc = 0.02 * jax.random.normal(k1, (n_embd, ff), dtype=jnp.float32)
    b_fc = 0.02 * jax.random.normal(k2, (ff,), dtype=jnp.float32)
    # nn.Linear(ff, n_embd).weight is (n_embd, ff); passed transposed (ff, n_embd)
    w_proj = 0.02 * jax.random.normal(k3, (ff, n_embd), dtype=jnp.float32)
    b_proj = 0.02 * jax.random.normal(k4, (n_embd,), dtype=jnp.float32)

    ref = reference_mlp(x, w_fc, b_fc, w_proj, b_proj)

    # 1) Auto config: weights-resident path (tf == F), row-tiled grid.
    out = jax.block_until_ready(mlp_forward(x, w_fc, b_fc, w_proj, b_proj))
    assert out.shape == (B, T, n_embd)
    assert jnp.allclose(out, ref, atol=1e-4, rtol=1e-4), "mismatch (resident)"

    # 2) Resident path with multiple row tiles.
    out2 = jax.block_until_ready(
        mlp_forward(x, w_fc, b_fc, w_proj, b_proj, tm=8))
    assert jnp.allclose(out2, ref, atol=1e-4, rtol=1e-4), "mismatch (multi-tile)"

    # 3) Force the F-streamed accumulation path (grid = (2, 2)).
    out3 = jax.block_until_ready(
        mlp_forward(x, w_fc, b_fc, w_proj, b_proj, tm=8, tf=128))
    assert jnp.allclose(out3, ref, atol=1e-4, rtol=1e-4), "mismatch (F-streamed)"

    print("KERNEL_OK")
</pallas_src>

<mosaic_0001>
module attributes {stable_mosaic.version = 11 : i64} {
  func.func @_mlp_kernel_resident(%arg0: i32, %arg1: memref<16x64xf32, #tpu.memory_space<vmem>>, %arg2: memref<64x256xf32, #tpu.memory_space<vmem>>, %arg3: memref<1x256xf32, #tpu.memory_space<vmem>>, %arg4: memref<256x64xf32, #tpu.memory_space<vmem>>, %arg5: memref<1x64xf32, #tpu.memory_space<vmem>>, %arg6: memref<16x64xf32, #tpu.memory_space<vmem>>) attributes {dimension_semantics = [#tpu.dimension_semantics<parallel>], iteration_bounds = array<i64: 1>, scalar_prefetch = 0 : i64, scratch_operands = 0 : i64, tpu.core_type = #tpu.core_type<tc>, window_params = [{transform_indices = @transform_0, window_bounds = array<i64: 16, 64>}, {pipeline_mode = #tpu.pipeline_mode<synchronous>, transform_indices = @transform_1, window_bounds = array<i64: 64, 256>}, {pipeline_mode = #tpu.pipeline_mode<synchronous>, transform_indices = @transform_2, window_bounds = array<i64: 1, 256>}, {pipeline_mode = #tpu.pipeline_mode<synchronous>, transform_indices = @transform_3, window_bounds = array<i64: 256, 64>}, {pipeline_mode = #tpu.pipeline_mode<synchronous>, transform_indices = @transform_4, window_bounds = array<i64: 1, 64>}, {transform_indices = @transform_5, window_bounds = array<i64: 16, 64>}]} {
    %c0 = arith.constant 0 : index
    %c0_0 = arith.constant 0 : index
    %0 = vector.load %arg1[%c0, %c0_0] : memref<16x64xf32, #tpu.memory_space<vmem>>, vector<16x64xf32>
    %c0_1 = arith.constant 0 : index
    %c0_2 = arith.constant 0 : index
    %1 = vector.load %arg2[%c0_1, %c0_2] : memref<64x256xf32, #tpu.memory_space<vmem>>, vector<64x256xf32>
    %cst = arith.constant dense<0.000000e+00> : vector<16x256xf32>
    %2 = tpu.matmul %0, %1, %cst {dimension_numbers = #tpu.dot_dimension_numbers<[1], [0], [0], [1], [0, 0, 1, 1], [], []>} : vector<16x64xf32>, vector<64x256xf32>, vector<16x256xf32> -> vector<16x256xf32>
    %c0_3 = arith.constant 0 : index
    %c0_4 = arith.constant 0 : index
    %3 = vector.load %arg3[%c0_3, %c0_4] : memref<1x256xf32, #tpu.memory_space<vmem>>, vector<1x256xf32>
    %4 = vector.broadcast %3 : vector<1x256xf32> to vector<16x256xf32>
    %5 = arith.addf %2, %4 : vector<16x256xf32>
    %cst_5 = arith.constant 5.000000e-01 : f32
    %6 = vector.broadcast %cst_5 : f32 to vector<16x256xf32>
    %7 = arith.mulf %6, %5 : vector<16x256xf32>
    %cst_6 = arith.constant 4.471500e-02 : f32
    %8 = vector.broadcast %cst_6 : f32 to vector<16x256xf32>
    %9 = arith.mulf %8, %5 : vector<16x256xf32>
    %10 = arith.mulf %9, %5 : vector<16x256xf32>
    %11 = arith.mulf %10, %5 : vector<16x256xf32>
    %12 = arith.addf %5, %11 : vector<16x256xf32>
    %cst_7 = arith.constant 0.797884583 : f32
    %13 = vector.broadcast %cst_7 : f32 to vector<16x256xf32>
    %14 = arith.mulf %13, %12 : vector<16x256xf32>
    %15 = math.tanh %14 : vector<16x256xf32>
    %cst_8 = arith.constant 1.000000e+00 : f32
    %16 = vector.broadcast %cst_8 : f32 to vector<16x256xf32>
    %17 = arith.addf %16, %15 : vector<16x256xf32>
    %18 = arith.mulf %7, %17 : vector<16x256xf32>
    %c0_9 = arith.constant 0 : index
    %c0_10 = arith.constant 0 : index
    %19 = vector.load %arg4[%c0_9, %c0_10] : memref<256x64xf32, #tpu.memory_space<vmem>>, vector<256x64xf32>
    %cst_11 = arith.constant dense<0.000000e+00> : vector<16x64xf32>
    %20 = tpu.matmul %18, %19, %cst_11 {dimension_numbers = #tpu.dot_dimension_numbers<[1], [0], [0], [1], [0, 0, 1, 1], [], []>} : vector<16x256xf32>, vector<256x64xf32>, vector<16x64xf32> -> vector<16x64xf32>
    %c0_12 = arith.constant 0 : index
    %c0_13 = arith.constant 0 : index
    %21 = vector.load %arg5[%c0_12, %c0_13] : memref<1x64xf32, #tpu.memory_space<vmem>>, vector<1x64xf32>
    %22 = vector.broadcast %21 : vector<1x64xf32> to vector<16x64xf32>
    %23 = arith.addf %20, %22 : vector<16x64xf32>
    %c0_14 = arith.constant 0 : index
    %c0_15 = arith.constant 0 : index
    %24 = vector.load %arg6[%c0_14, %c0_15] : memref<16x64xf32, #tpu.memory_space<vmem>>, vector<16x64xf32>
    tpu.vector_store %arg6[%c0_14, %c0_15], %23 {strides = array<i32>} : memref<16x64xf32, #tpu.memory_space<vmem>>, vector<16x64xf32>,
    return
  }
  func.func @transform_0(%arg0: i32) -> (i32, i32) {
    %c0_i32 = arith.constant 0 : i32
    %c0_i32_0 = arith.constant 0 : i32
    return %arg0, %c0_i32 : i32, i32
  }
  func.func @transform_1(%arg0: i32) -> (i32, i32) {
    %c0_i32 = arith.constant 0 : i32
    %c0_i32_0 = arith.constant 0 : i32
    %c0_i32_1 = arith.constant 0 : i32
    return %c0_i32, %c0_i32_0 : i32, i32
  }
  func.func @transform_2(%arg0: i32) -> (i32, i32) {
    %c0_i32 = arith.constant 0 : i32
    %c0_i32_0 = arith.constant 0 : i32
    %c0_i32_1 = arith.constant 0 : i32
    return %c0_i32, %c0_i32_0 : i32, i32
  }
  func.func @transform_3(%arg0: i32) -> (i32, i32) {
    %c0_i32 = arith.constant 0 : i32
    %c0_i32_0 = arith.constant 0 : i32
    %c0_i32_1 = arith.constant 0 : i32
    return %c0_i32, %c0_i32_0 : i32, i32
  }
  func.func @transform_4(%arg0: i32) -> (i32, i32) {
    %c0_i32 = arith.constant 0 : i32
    %c0_i32_0 = arith.constant 0 : i32
    %c0_i32_1 = arith.constant 0 : i32
    return %c0_i32, %c0_i32_0 : i32, i32
  }
  func.func @transform_5(%arg0: i32) -> (i32, i32) {
    %c0_i32 = arith.constant 0 : i32
    %c0_i32_0 = arith.constant 0 : i32
    return %arg0, %c0_i32 : i32, i32
  }
}

</mosaic_0001>

<bundles_post_ra>
// kernel: tpu_custom_call.1
= control target key start
LH: loop header
LB: loop body
LE: loop exit
PB: predicated region body
PF: predicated region fallthrough
CT: control target
= control target key end

     0   :  { %s476_s0 = inlined_call_operand.vmem [shape: f32[16,64], index: 0, kind: input, shape index: {}]   ;;  %s477_s1 = inlined_call_operand.vmem [shape: f32[64,256], index: 1, kind: input, shape index: {}]   ;;  %s478_s2 = inlined_call_operand.vmem [shape: f32[1,256], index: 2, kind: input, shape index: {}]   ;;  %s479_s3 = inlined_call_operand.vmem [shape: f32[256,64], index: 3, kind: input, shape index: {}]   ;;  %s480_s4 = inlined_call_operand.vmem [shape: f32[1,64], index: 4, kind: input, shape index: {}]   ;;  %s481_s5 = inlined_call_operand.hbm [shape: f32[16,64], index: 5, kind: output, shape index: {}]  }
   0x1   :  { %v37_v0 = vld [vmem:[%s477_s1 + $0x70] sm:$0xff]  ;;  %v38_v1 = vld [vmem:[%s477_s1 + $0x78] sm:$0xff]  ;;  %v35_v2 = vld [vmem:[%s477_s1 + $0x60] sm:$0xff] }
   0x2   :  { %60 = vmatpush.msra.mxu0 %v37_v0  ;;  %83 = vmatpush.msra.mxu1 %v38_v1  ;;  %v36_v3 = vld [vmem:[%s477_s1 + $0x68] sm:$0xff]  ;;  %v33_v4 = vld [vmem:[%s477_s1 + $0x50] sm:$0xff]  ;;  %v34_v5 = vld [vmem:[%s477_s1 + $0x58] sm:$0xff] }
   0x3   :  { %v31_v6 = vld [vmem:[%s477_s1 + $0x40] sm:$0xff]  ;;  %v32_v7 = vld [vmem:[%s477_s1 + $0x48] sm:$0xff]  ;;  %v29_v8 = vld [vmem:[%s477_s1 + $0x30] sm:$0xff] }
   0x4   :  { %61 = vmatpush.msra.mxu0 %v35_v2  ;;  %84 = vmatpush.msra.mxu1 %v36_v3  ;;  %v30_v9 = vld [vmem:[%s477_s1 + $0x38] sm:$0xff]  ;;  %v148_v12 = vld [vmem:[%s479_s3 + $0x70] sm:$0xff]  ;;  %v27_v14 = vld [vmem:[%s477_s1 + $0x20] sm:$0xff] }
   0x5   :  { %v149_v10 = vld [vmem:[%s479_s3 + $0x78] sm:$0xff]  ;;  %v164_v13 = vld [vmem:[%s479_s3 + $0xf0] sm:$0xff]  ;;  %v28_v15 = vld [vmem:[%s477_s1 + $0x28] sm:$0xff] }
   0x6   :  { %62 = vmatpush.msra.mxu0 %v33_v4  ;;  %85 = vmatpush.msra.mxu1 %v34_v5  ;;  %v165_v11 = vld [vmem:[%s479_s3 + $0xf8] sm:$0xff]  ;;  %v147_v16 = vld [vmem:[%s479_s3 + $0x68] sm:$0xff] }
   0x7   :  { %170 = vmatpush.msra.mxu2 %v149_v10  ;;  %193 = vmatpush.msra.mxu3 %v165_v11  ;;  %v163_v17 = vld [vmem:[%s479_s3 + $0xe8] sm:$0xff] }
   0x8   :  { %63 = vmatpush.msra.mxu0 %v31_v6  ;;  %86 = vmatpush.msra.mxu1 %v32_v7 }
   0xa   :  { %64 = vmatpush.msra.mxu0 %v29_v8  ;;  %87 = vmatpush.msra.mxu1 %v30_v9 }
   0xb   :  { %10 = vsyncpa [#allocation3], 0  ;;  %v25_v18 = vld [vmem:[%s477_s1 + $0x10] sm:$0xff]  ;;  %v26_v19 = vld [vmem:[%s477_s1 + $0x18] sm:$0xff]  ;;  %171 = vmatpush.msra.mxu2 %v148_v12  ;;  %194 = vmatpush.msra.mxu3 %v164_v13  ;;  %vm45_vm0 = vcmask 523264   ;;  %s278_s16 = smov [#allocation2]  }
   0xc   :  { %65 = vmatpush.msra.mxu0 %v27_v14  ;;  %88 = vmatpush.msra.mxu1 %v28_v15  ;;  %v146_v20 = vld [vmem:[%s479_s3 + $0x60] sm:$0xff]  ;;  %v24_v23 = vld [vmem:[%s477_s1 + $0x8] sm:$0xff]  ;;  %v145_v26 = vld [vmem:[%s479_s3 + $0x58] sm:$0xff]  ;;  %s222_s17 = sshll.u32 %s278_s16, 4  ;;  %s280_s20 = smov 8   ;;  %s223_s17 = int_to_ptr.vmem [resolvable:$true] %s222_s17 }
   0xd   :  { %v162_v21 = vld [vmem:[%s479_s3 + $0xe0] sm:$0xff]  ;;  %172 = vmatpush.msra.mxu2 %v147_v16  ;;  %195 = vmatpush.msra.mxu3 %v163_v17  ;;  %v22_v25 = vld [vmem:[%s476_s0 + $0x8] sm:$0xff]  ;;  %v161_v27 = vld [vmem:[%s479_s3 + $0xd8] sm:$0xff] }
   0xe   :  { %v23_v22 = vld [vmem:[%s477_s1] sm:$0xff]  ;;  %66 = vmatpush.msra.mxu0 %v25_v18  ;;  %89 = vmatpush.msra.mxu1 %v26_v19  ;;  %v144_v28 = vld [vmem:[%s479_s3 + $0x50] sm:$0xff]  ;;  %v143_v30 = vld [vmem:[%s479_s3 + $0x48] sm:$0xff]  ;;  %s224_s1 = sshll.u32 %s481_s5, 4  ;;  %s225_s1 = int_to_ptr.hbm [resolvable:$true] %s224_s1 }
   0xf   :  { %v21_v24 = vld [vmem:[%s476_s0] sm:$0xff]  ;;  %173 = vmatpush.msra.mxu2 %v146_v20  ;;  %196 = vmatpush.msra.mxu3 %v162_v21  ;;  %v160_v29 = vld [vmem:[%s479_s3 + $0xd0] sm:$0xff]  ;;  %v159_v31 = vld [vmem:[%s479_s3 + $0xc8] sm:$0xff] }
  0x10   :  { %67 = vmatpush.msra.mxu0 %v23_v22  ;;  %90 = vmatpush.msra.mxu1 %v24_v23  ;;  %v142_v32 = vld [vmem:[%s479_s3 + $0x40] sm:$0xff]  ;;  %v141_v34 = vld [vmem:[%s479_s3 + $0x38] sm:$0xff]  ;;  %v140_v36 = vld [vmem:[%s479_s3 + $0x30] sm:$0xff] }
  0x11   :  { %236 = vmatmul.msk.f32.vlgmr.msra.gmra.mxu0 %vm45_vm0, %v21_v24  ;;  %238 = vmatmul.msk.f32.vlgmr.msra.gmra.mxu1 %vm45_vm0, %v21_v24  ;;  %v158_v33 = vld [vmem:[%s479_s3 + $0xc0] sm:$0xff]  ;;  %v157_v35 = vld [vmem:[%s479_s3 + $0xb8] sm:$0xff]  ;;  %v156_v37 = vld [vmem:[%s479_s3 + $0xb0] sm:$0xff] }
  0x12   :  { %174 = vmatpush.msra.mxu2 %v145_v26  ;;  %197 = vmatpush.msra.mxu3 %v161_v27  ;;  %v139_v38 = vld [vmem:[%s479_s3 + $0x28] sm:$0xff]  ;;  %v138_v40 = vld [vmem:[%s479_s3 + $0x20] sm:$0xff]  ;;  %v137_v42 = vld [vmem:[%s479_s3 + $0x18] sm:$0xff] }
  0x13   :  { %v155_v39 = vld [vmem:[%s479_s3 + $0xa8] sm:$0xff]  ;;  %v154_v41 = vld [vmem:[%s479_s3 + $0xa0] sm:$0xff]  ;;  %v153_v43 = vld [vmem:[%s479_s3 + $0x98] sm:$0xff] }
  0x14   :  { %175 = vmatpush.msra.mxu2 %v144_v28  ;;  %198 = vmatpush.msra.mxu3 %v160_v29  ;;  %v136_v44 = vld [vmem:[%s479_s3 + $0x10] sm:$0xff]  ;;  %v135_v46 = vld [vmem:[%s479_s3 + $0x8] sm:$0xff]  ;;  %v134_v48 = vld [vmem:[%s479_s3] sm:$0xff] }
  0x15   :  { %v152_v45 = vld [vmem:[%s479_s3 + $0x90] sm:$0xff]  ;;  %v151_v47 = vld [vmem:[%s479_s3 + $0x88] sm:$0xff]  ;;  %v150_v49 = vld [vmem:[%s479_s3 + $0x80] sm:$0xff] }
  0x16   :  { %176 = vmatpush.msra.mxu2 %v143_v30  ;;  %199 = vmatpush.msra.mxu3 %v159_v31  ;;  %v39_v50 = vld [vmem:[%s478_s2] sm:$0x3] }
  0x17   :  { %v41_v51 = vperm.slane %v39_v50, 0  ;;  %v42_v52 = vperm.slane %v39_v50, 1 }
  0x18   :  { %177 = vmatpush.msra.mxu2 %v142_v32  ;;  %200 = vmatpush.msra.mxu3 %v158_v33  ;;  %v243_v33 = vld [vmem:[%s480_s4] ss:$0 sm:$0xff]  ;;  %s279_s4 = smov 128  }
  0x19   :  { %237 = vmatmul.msk.f32.gmra.mxu0 %vm45_vm0, %v22_v25  ;;  %239 = vmatmul.msk.f32.gmra.mxu1 %vm45_vm0, %v22_v25 }
  0x1a   :  { %178 = vmatpush.msra.mxu2 %v141_v34  ;;  %201 = vmatpush.msra.mxu3 %v157_v35 }
  0x1c   :  { %179 = vmatpush.msra.mxu2 %v140_v36  ;;  %202 = vmatpush.msra.mxu3 %v156_v37 }
  0x1e   :  { %180 = vmatpush.msra.mxu2 %v139_v38  ;;  %203 = vmatpush.msra.mxu3 %v155_v39 }
  0x20   :  { %181 = vmatpush.msra.mxu2 %v138_v40  ;;  %204 = vmatpush.msra.mxu3 %v154_v41 }
  0x22   :  { %182 = vmatpush.msra.mxu2 %v137_v42  ;;  %205 = vmatpush.msra.mxu3 %v153_v43 }
  0x24   :  { %183 = vmatpush.msra.mxu2 %v136_v44  ;;  %206 = vmatpush.msra.mxu3 %v152_v45 }
  0x26   :  { %184 = vmatpush.msra.mxu2 %v135_v46  ;;  %207 = vmatpush.msra.mxu3 %v151_v47 }
  0x28   :  { %185 = vmatpush.msra.mxu2 %v134_v48  ;;  %208 = vmatpush.msra.mxu3 %v150_v49 }
  0x8e   :  { %v69_v53 = vpop.f32.mrf.mxu0  ;;  %v92_v54 = vpop.f32.mrf.mxu1 }
  0x8f   :  { %v70_v55 = vadd.f32 %v69_v53, %v41_v51  ;;  %v93_v56 = vadd.f32 %v92_v54, %v42_v52 }
  0x91   :  { %v102_v57 = vmul.f32 0.044715, %v70_v55  ;;  %v103_v58 = vmul.f32 0.044715, %v93_v56  ;;  %v98_v17 = vmul.f32 0.5, %v70_v55  ;;  %v99_v21 = vmul.f32 0.5, %v93_v56 }
  0x93   :  { %v106_v59 = vmul.f32 %v102_v57, %v70_v55  ;;  %v107_v60 = vmul.f32 %v103_v58, %v93_v56 }
  0x95   :  { %v110_v61 = vmul.f32 %v106_v59, %v70_v55  ;;  %v111_v62 = vmul.f32 %v107_v60, %v93_v56 }
  0x96   :  { %v72_v63 = vpop.f32.mrf.mxu0  ;;  %v95_v0 = vpop.f32.mrf.mxu1 }
  0x97   :  { %v73_v1 = vadd.f32 %v72_v63, %v41_v51  ;;  %v96_v2 = vadd.f32 %v95_v0, %v42_v52  ;;  %v114_v3 = vadd.f32 %v110_v61, %v70_v55  ;;  %v115_v4 = vadd.f32 %v111_v62, %v93_v56 }
  0x99   :  { %v118_v5 = vmul.f32 0.7978846, %v114_v3  ;;  %v119_v6 = vmul.f32 0.7978846, %v115_v4  ;;  %v104_v7 = vmul.f32 0.044715, %v73_v1 }
  0x9a   :  { %v105_v8 = vmul.f32 0.044715, %v96_v2  ;;  %v100_v27 = vmul.f32 0.5, %v73_v1  ;;  %v101_v29 = vmul.f32 0.5, %v96_v2 }
  0x9b   :  { %244 = vtanh.f32 %v118_v5  ;;  %v108_v9 = vmul.f32 %v104_v7, %v73_v1 }
  0x9c   :  { %246 = vtanh.f32 %v119_v6  ;;  %v109_v10 = vmul.f32 %v105_v8, %v96_v2 }
  0x9d   :  { %v112_v11 = vmul.f32 %v108_v9, %v73_v1 }
  0x9e   :  { %v113_v12 = vmul.f32 %v109_v10, %v96_v2 }
  0x9f   :  { %v116_v13 = vadd.f32 %v112_v11, %v73_v1 }
  0xa0   :  { %v117_v14 = vadd.f32 %v113_v12, %v96_v2 }
  0xa1   :  { %v245_v15 = vpop.eup %244  ;;  %v120_v19 = vmul.f32 0.7978846, %v116_v13 }
  0xa2   :  { %v247_v16 = vpop.eup %246  ;;  %v126_v18 = vadd.f32 1.0, %v245_v15  ;;  %v121_v20 = vmul.f32 0.7978846, %v117_v14 }
  0xa3   :  { %v127_v22 = vadd.f32 1.0, %v247_v16  ;;  %248 = vtanh.f32 %v120_v19 }
  0xa4   :  { %v130_v23 = vmul.f32 %v126_v18, %v98_v17  ;;  %250 = vtanh.f32 %v121_v20 }
  0xa5   :  { %v131_v24 = vmul.f32 %v127_v22, %v99_v21 }
  0xa6   :  { %186 = vmatmul.f32.vlgmr.msra.gmra.mxu2 %v130_v23 }
  0xa7   :  { %209 = vmatmul.f32.vlgmr.msra.gmra.mxu3 %v131_v24 }
  0xa9   :  { %v249_v25 = vpop.eup %248 }
  0xaa   :  { %v251_v26 = vpop.eup %250  ;;  %v128_v28 = vadd.f32 1.0, %v249_v25 }
  0xab   :  { %v129_v30 = vadd.f32 1.0, %v251_v26 }
  0xac   :  { %v132_v31 = vmul.f32 %v128_v28, %v100_v27 }
  0xad   :  { %v133_v32 = vmul.f32 %v129_v30, %v101_v29 }
  0xae   :  { %189 = vmatmul.f32.gmra.mxu2 %v132_v31 }
  0xaf   :  { %212 = vmatmul.f32.gmra.mxu3 %v133_v32 }
 0x129   :  { %v187_v34 = vpop.f32.mrf.mxu2 }
 0x12a   :  { %v188_v35 = vadd.f32 %v243_v33, %v187_v34  ;;  %v210_v36 = vpop.f32.mrf.mxu3 }
 0x12c   :  { %v211_v37 = vadd.f32 %v210_v36, %v188_v35 }
 0x12e   :  { %216 = vst.msk [vmem:[#allocation2] sm:$0xff] %vm45_vm0, %v211_v37 }
 0x131   :  { %v190_v38 = vpop.f32.mrf.mxu2 }
 0x132   :  { %v191_v39 = vadd.f32 %v243_v33, %v190_v38  ;;  %v213_v40 = vpop.f32.mrf.mxu3 }
 0x134   :  { %v214_v41 = vadd.f32 %v213_v40, %v191_v39 }
 0x136   :  { %217 = vst.msk [vmem:[#allocation2 + $0x8] sm:$0xff] %vm45_vm0, %v214_v41 }
 0x137   :  { %230 = dma.vmem_to_hbm [thread:$0]  %s223_s17, 256, %s225_s1, [#allocation3], %s279_s4, %s279_s4, %s280_s20  }
 0x138   :  { %276 = dma.done.wait [#allocation3], 256  }
 0x139   :  { %277 = vsyncadd [#allocation3], 4294967040 }
 0x13a   :  { %235 = vsyncpa [#allocation3], 1 }

</bundles_post_ra>
